<compile_context>
chip_gen: v7x
topology: tpu7x:2x2x1
jax: 0.10.0
libtpu: 0.0.40
codegen_flags: <defaults>
</compile_context>

<pallas_src>
import jax
import jax.numpy as jnp
from jax.experimental import pallas as pl
from jax.experimental.pallas import tpu as pltpu

KSIZE = 7
PAD = (KSIZE - 1) // 2
LANE = 128


def _sigmoid(v):
    # 0.5*(1+tanh(v/2)) == 1/(1+exp(-v)); tanh routes to the EUP slot.
    return 0.5 * (1.0 + jnp.tanh(0.5 * v))


def _make_kernel(H, W):
    """Kernel closure over static spatial sizes H, W (HW*pad is the lane dim)."""
    HW = H * W
    inv_hw = 1.0 / HW

    def kernel(x_ref, w1t_ref, b1_ref, w2t_ref, b2_ref, p_ref, s_ref,
               kh_ref, bh_ref, kw_ref, bw_ref, o_ref):
        x = x_ref[...]                               # (Bt, C, HWp), native dtype
        Bt, C, _ = x.shape
        inv_c = 1.0 / C

        # ---- pooled statistics (f32 accumulation, pad columns are zero) ----
        c_pool = jnp.sum(x, axis=2, dtype=jnp.float32) * inv_hw     # (Bt, C)
        xc = jnp.sum(x, axis=1, dtype=jnp.float32) * inv_c          # (Bt, HWp)
        # pools[:, :H] = mean over (C, W); pools[:, H:] = mean over (C, H)
        # (f32 MXU dot; default precision already matched the f32 ref < 1e-5)
        pools = jnp.dot(xc, p_ref[...], preferred_element_type=jnp.float32)
        h_pool = pools[:, :H]                        # (Bt, H)
        w_pool = pools[:, H:]                        # (Bt, W)

        # ---- channel branch: 1x1 conv -> ReLU -> 1x1 conv -> sigmoid -------
        z1 = jnp.dot(c_pool, w1t_ref[...],
                     preferred_element_type=jnp.float32) + b1_ref[...]   # (Bt, Cr)
        z1 = jnp.maximum(z1, 0.0)
        c_scale = _sigmoid(
            jnp.dot(z1, w2t_ref[...],
                    preferred_element_type=jnp.float32) + b2_ref[...])   # (Bt, C)

        # ---- height branch: 1-D conv (k=7, pad=3) along H, sigmoid ---------
        zpad = jnp.zeros((Bt, PAD), jnp.float32)
        hp = jnp.concatenate([zpad, h_pool, zpad], axis=1)               # (Bt, H+6)
        h_acc = jnp.full((Bt, H), bh_ref[0], dtype=jnp.float32)
        for k in range(KSIZE):                       # static unroll, SMEM taps
            h_acc = h_acc + kh_ref[k] * hp[:, k:k + H]
        h_scale = _sigmoid(h_acc)                    # (Bt, H)

        # ---- width branch: 1-D conv (k=7, pad=3) along W, sigmoid ----------
        wp = jnp.concatenate([zpad, w_pool, zpad], axis=1)               # (Bt, W+6)
        w_acc = jnp.full((Bt, W), bw_ref[0], dtype=jnp.float32)
        for k in range(KSIZE):
            w_acc = w_acc + kw_ref[k] * wp[:, k:k + W]
        w_scale = _sigmoid(w_acc)                    # (Bt, W)

        # ---- expand gates to the flat lane-dense (HWp) layout via MXU -------
        s = s_ref[...]                                                   # (H+W, HWp)
        h_flat = jnp.dot(h_scale, s[:H, :], preferred_element_type=jnp.float32)
        w_flat = jnp.dot(w_scale, s[H:, :], preferred_element_type=jnp.float32)
        gate = (h_flat * w_flat).astype(x.dtype)                         # (Bt, HWp)
        cs = c_scale.astype(x.dtype)                                     # (Bt, C)

        # ---- fused multiply in native dtype: (x * gate) first (sublane
        # splat), then the single lane-broadcast channel factor --------------
        out = (x * gate[:, None, :]) * cs[:, :, None]
        o_ref[...] = out.astype(o_ref.dtype)

    return kernel


def _vmem_limit_bytes():
    """~75% of physical VMEM, capped at 100 MiB; conservative 48 MiB fallback."""
    cap = 64 << 20
    try:
        info = pltpu.get_tpu_info()
        c = getattr(info, "vmem_capacity_bytes", None)
        if c:
            cap = int(c)
    except Exception:
        pass
    return min((cap * 3) // 4, 100 << 20)


def _pick_block_batch(batch, per_sample_bytes, target_bytes):
    """Largest divisor of `batch` whose f32 working-set block fits the budget,
    preferring choices that leave >= 2 grid steps (2-TC sharding on v7x)."""
    cap = max(1, target_bytes // per_sample_bytes)
    divisors = [d for d in range(1, batch + 1) if batch % d == 0]
    fits = [d for d in divisors if d <= cap] or [1]
    multi = [d for d in fits if batch // d >= 2]
    return max(multi) if multi else max(fits)


def nonlocal_pallas(x, params):
    B, C, H, W = x.shape
    HW = H * W
    HWp = -(-HW // LANE) * LANE                 # pad lane dim to multiple of 128
    w1, b1, w2, b2, kh, bh, kw, bw = params
    Cr = w1.shape[0]

    # --- wrapper-side layout prep (pure transposes / constants, no math) ----
    w1t = w1.T                                   # (C, Cr)
    w2t = w2.T                                   # (Cr, C)
    b1r = b1.reshape(1, Cr)                      # lane-major biases
    b2r = b2.reshape(1, C)

    j = jnp.arange(HWp)
    valid = j < HW
    sh = ((j[None, :] // W == jnp.arange(H)[:, None]) & valid[None, :]).astype(jnp.float32)
    sw = ((j[None, :] % W == jnp.arange(W)[:, None]) & valid[None, :]).astype(jnp.float32)
    s_sel = jnp.concatenate([sh, sw], axis=0)                              # (H+W, HWp)
    p_pool = jnp.concatenate([sh.T / W, sw.T / H], axis=1)                 # (HWp, H+W)

    x_flat = x.reshape(B, C, HW)                 # lane-dense layout
    if HWp != HW:
        x_flat = jnp.pad(x_flat, ((0, 0), (0, 0), (0, HWp - HW)))

    vmem_limit = _vmem_limit_bytes()
    # Budget ~ vmem_limit / 6: 2x input bufs + 2x output bufs + in-kernel
    # working set; per-sample bytes counted at 4 B/elem (f32 working set).
    target_bytes = max(1 << 20, vmem_limit // 6)
    Bt = _pick_block_batch(B, C * HWp * 4, target_bytes)
    grid = (B // Bt,)

    def const2d(shape):
        return pl.BlockSpec(shape, lambda i: (0, 0))

    smem = pl.BlockSpec(memory_space=pltpu.MemorySpace.SMEM)

    out_flat = pl.pallas_call(
        _make_kernel(H, W),
        out_shape=jax.ShapeDtypeStruct((B, C, HWp), x.dtype),
        grid=grid,
        in_specs=[
            pl.BlockSpec((Bt, C, HWp), lambda i: (i, 0, 0)),  # x (flat, lane-dense)
            const2d((C, Cr)),                                 # W1^T (1x1 conv C->Cr)
            const2d((1, Cr)),                                 # b1
            const2d((Cr, C)),                                 # W2^T (1x1 conv Cr->C)
            const2d((1, C)),                                  # b2
            const2d((HWp, H + W)),                            # pooling matrix P
            const2d((H + W, HWp)),                            # gate-expansion selector S
            smem,                                             # kh (7,) height conv taps
            smem,                                             # bh (1,)
            smem,                                             # kw (7,) width conv taps
            smem,                                             # bw (1,)
        ],
        out_specs=pl.BlockSpec((Bt, C, HWp), lambda i: (i, 0, 0)),
        compiler_params=pltpu.CompilerParams(
            dimension_semantics=("parallel",),
            vmem_limit_bytes=int(vmem_limit),
        ),
    )(x_flat, w1t, b1r, w2t, b2r, p_pool, s_sel, kh, bh, kw, bw)

    out = out_flat[:, :, :HW] if HWp != HW else out_flat
    return out.reshape(B, C, H, W)


def nonlocal_ref(x, params):
    """Pure-JAX reference matching the PyTorch forward exactly."""
    w1, b1, w2, b2, kh, bh, kw, bw = params
    B, C, H, W = x.shape
    c_pool = jnp.mean(x, axis=(2, 3))                              # (B, C)
    z1 = jnp.maximum(c_pool @ w1.T + b1[:, 0], 0.0)                # (B, Cr)
    c_ = 1.0 / (1.0 + jnp.exp(-(z1 @ w2.T + b2[:, 0])))            # (B, C)
    h_pool = jnp.mean(x, axis=(1, 3))                              # (B, H)
    hp = jnp.pad(h_pool, ((0, 0), (PAD, PAD)))
    h_conv = bh[0] + sum(kh[k] * hp[:, k:k + H] for k in range(KSIZE))
    h_ = 1.0 / (1.0 + jnp.exp(-h_conv))                            # (B, H)
    w_pool = jnp.mean(x, axis=(1, 2))                              # (B, W)
    wp = jnp.pad(w_pool, ((0, 0), (PAD, PAD)))
    w_conv = bw[0] + sum(kw[k] * wp[:, k:k + W] for k in range(KSIZE))
    w_ = 1.0 / (1.0 + jnp.exp(-w_conv))                            # (B, W)
    return x * c_[:, :, None, None] * h_[:, None, :, None] * w_[:, None, None, :]


if __name__ == "__main__":
    B, C, H, W = 2, 32, 16, 16
    reduction = 16
    Cr = C // reduction

    key = jax.random.PRNGKey(0)
    ks = jax.random.split(key, 9)
    x = jax.random.normal(ks[0], (B, C, H, W), jnp.float32)
    # Parameter shapes follow NonLocal.__init__:
    #   channel[0]: Conv2d(C, Cr, 1) -> weight (Cr, C), bias (Cr,)
    #   channel[2]: Conv2d(Cr, C, 1) -> weight (C, Cr), bias (C,)
    #   height[0]:  Conv2d(1, 1, (7, 1)) -> weight (7,), bias (1,)
    #   width[0]:   Conv2d(1, 1, (1, 7)) -> weight (7,), bias (1,)
    w1 = jax.random.normal(ks[1], (Cr, C), jnp.float32) * 0.2
    b1 = jax.random.normal(ks[2], (Cr, 1), jnp.float32) * 0.1
    w2 = jax.random.normal(ks[3], (C, Cr), jnp.float32) * 0.2
    b2 = jax.random.normal(ks[4], (C, 1), jnp.float32) * 0.1
    kh = jax.random.normal(ks[5], (KSIZE,), jnp.float32) * 0.3
    bh = jax.random.normal(ks[6], (1,), jnp.float32) * 0.1
    kw = jax.random.normal(ks[7], (KSIZE,), jnp.float32) * 0.3
    bw = jax.random.normal(ks[8], (1,), jnp.float32) * 0.1
    params = (w1, b1, w2, b2, kh, bh, kw, bw)

    out = jax.block_until_ready(nonlocal_pallas(x, params))
    ref = jax.block_until_ready(nonlocal_ref(x, params))

    assert out.shape == (B, C, H, W)
    max_err = float(jnp.max(jnp.abs(out - ref)))
    assert jnp.allclose(out, ref, atol=1e-5, rtol=1e-5), max_err
    print("KERNEL_OK")
</pallas_src>

<mosaic_0001>
module attributes {stable_mosaic.version = 11 : i64} {
  func.func @kernel(%arg0: i32, %arg1: memref<1x32x256xf32, #tpu.memory_space<vmem>>, %arg2: memref<32x2xf32, #tpu.memory_space<vmem>>, %arg3: memref<1x2xf32, #tpu.memory_space<vmem>>, %arg4: memref<2x32xf32, #tpu.memory_space<vmem>>, %arg5: memref<1x32xf32, #tpu.memory_space<vmem>>, %arg6: memref<256x32xf32, #tpu.memory_space<vmem>>, %arg7: memref<32x256xf32, #tpu.memory_space<vmem>>, %arg8: memref<7xf32, #tpu.memory_space<smem>>, %arg9: memref<1xf32, #tpu.memory_space<smem>>, %arg10: memref<7xf32, #tpu.memory_space<smem>>, %arg11: memref<1xf32, #tpu.memory_space<smem>>, %arg12: memref<1x32x256xf32, #tpu.memory_space<vmem>>) attributes {dimension_semantics = [#tpu.dimension_semantics<parallel>], iteration_bounds = array<i64: 2>, scalar_prefetch = 0 : i64, scratch_operands = 0 : i64, tpu.core_type = #tpu.core_type<tc>, window_params = [{transform_indices = @transform_0, window_bounds = array<i64: 1, 32, 256>}, {pipeline_mode = #tpu.pipeline_mode<synchronous>, transform_indices = @transform_1, window_bounds = array<i64: 32, 2>}, {pipeline_mode = #tpu.pipeline_mode<synchronous>, transform_indices = @transform_2, window_bounds = array<i64: 1, 2>}, {pipeline_mode = #tpu.pipeline_mode<synchronous>, transform_indices = @transform_3, window_bounds = array<i64: 2, 32>}, {pipeline_mode = #tpu.pipeline_mode<synchronous>, transform_indices = @transform_4, window_bounds = array<i64: 1, 32>}, {pipeline_mode = #tpu.pipeline_mode<synchronous>, transform_indices = @transform_5, window_bounds = array<i64: 256, 32>}, {pipeline_mode = #tpu.pipeline_mode<synchronous>, transform_indices = @transform_6, window_bounds = array<i64: 32, 256>}, {transform_indices = @transform_7, window_bounds = array<i64: 7>}, {transform_indices = @transform_8, window_bounds = array<i64: 1>}, {transform_indices = @transform_9, window_bounds = array<i64: 7>}, {transform_indices = @transform_10, window_bounds = array<i64: 1>}, {transform_indices = @transform_11, window_bounds = array<i64: 1, 32, 256>}]} {
    %c0 = arith.constant 0 : index
    %c0_0 = arith.constant 0 : index
    %c0_1 = arith.constant 0 : index
    %0 = vector.load %arg1[%c0, %c0_0, %c0_1] : memref<1x32x256xf32, #tpu.memory_space<vmem>>, vector<1x32x256xf32>
    %cst = arith.constant dense<0.000000e+00> : vector<1x32xf32>
    %1 = vector.multi_reduction <add>, %0, %cst [2] : vector<1x32x256xf32> to vector<1x32xf32>
    %cst_2 = arith.constant 3.906250e-03 : f32
    %2 = vector.broadcast %cst_2 : f32 to vector<1x32xf32>
    %3 = arith.mulf %1, %2 : vector<1x32xf32>
    %cst_3 = arith.constant dense<0.000000e+00> : vector<1x256xf32>
    %4 = vector.multi_reduction <add>, %0, %cst_3 [1] : vector<1x32x256xf32> to vector<1x256xf32>
    %cst_4 = arith.constant 3.125000e-02 : f32
    %5 = vector.broadcast %cst_4 : f32 to vector<1x256xf32>
    %6 = arith.mulf %4, %5 : vector<1x256xf32>
    %c0_5 = arith.constant 0 : index
    %c0_6 = arith.constant 0 : index
    %7 = vector.load %arg6[%c0_5, %c0_6] : memref<256x32xf32, #tpu.memory_space<vmem>>, vector<256x32xf32>
    %cst_7 = arith.constant dense<0.000000e+00> : vector<1x32xf32>
    %8 = tpu.matmul %6, %7, %cst_7 {dimension_numbers = #tpu.dot_dimension_numbers<[1], [0], [0], [1], [0, 0, 1, 1], [], []>} : vector<1x256xf32>, vector<256x32xf32>, vector<1x32xf32> -> vector<1x32xf32>
    %9 = vector.extract_strided_slice %8 {offsets = [0, 0], sizes = [1, 16], strides = [1, 1]} : vector<1x32xf32> to vector<1x16xf32>
    %10 = vector.extract_strided_slice %8 {offsets = [0, 16], sizes = [1, 16], strides = [1, 1]} : vector<1x32xf32> to vector<1x16xf32>
    %c0_8 = arith.constant 0 : index
    %c0_9 = arith.constant 0 : index
    %11 = vector.load %arg2[%c0_8, %c0_9] : memref<32x2xf32, #tpu.memory_space<vmem>>, vector<32x2xf32>
    %cst_10 = arith.constant dense<0.000000e+00> : vector<1x2xf32>
    %12 = tpu.matmul %3, %11, %cst_10 {dimension_numbers = #tpu.dot_dimension_numbers<[1], [0], [0], [1], [0, 0, 1, 1], [], []>} : vector<1x32xf32>, vector<32x2xf32>, vector<1x2xf32> -> vector<1x2xf32>
    %c0_11 = arith.constant 0 : index
    %c0_12 = arith.constant 0 : index
    %13 = vector.load %arg3[%c0_11, %c0_12] : memref<1x2xf32, #tpu.memory_space<vmem>>, vector<1x2xf32>
    %14 = arith.addf %12, %13 : vector<1x2xf32>
    %cst_13 = arith.constant 0.000000e+00 : f32
    %15 = vector.broadcast %cst_13 : f32 to vector<1x2xf32>
    %16 = arith.maximumf %14, %15 : vector<1x2xf32>
    %c0_14 = arith.constant 0 : index
    %c0_15 = arith.constant 0 : index
    %17 = vector.load %arg4[%c0_14, %c0_15] : memref<2x32xf32, #tpu.memory_space<vmem>>, vector<2x32xf32>
    %cst_16 = arith.constant dense<0.000000e+00> : vector<1x32xf32>
    %18 = tpu.matmul %16, %17, %cst_16 {dimension_numbers = #tpu.dot_dimension_numbers<[1], [0], [0], [1], [0, 0, 1, 1], [], []>} : vector<1x2xf32>, vector<2x32xf32>, vector<1x32xf32> -> vector<1x32xf32>
    %c0_17 = arith.constant 0 : index
    %c0_18 = arith.constant 0 : index
    %19 = vector.load %arg5[%c0_17, %c0_18] : memref<1x32xf32, #tpu.memory_space<vmem>>, vector<1x32xf32>
    %20 = arith.addf %18, %19 : vector<1x32xf32>
    %cst_19 = arith.constant 5.000000e-01 : f32
    %21 = vector.broadcast %cst_19 : f32 to vector<1x32xf32>
    %22 = arith.mulf %21, %20 : vector<1x32xf32>
    %23 = math.tanh %22 : vector<1x32xf32>
    %cst_20 = arith.constant 1.000000e+00 : f32
    %24 = vector.broadcast %cst_20 : f32 to vector<1x32xf32>
    %25 = arith.addf %24, %23 : vector<1x32xf32>
    %cst_21 = arith.constant 5.000000e-01 : f32
    %26 = vector.broadcast %cst_21 : f32 to vector<1x32xf32>
    %27 = arith.mulf %26, %25 : vector<1x32xf32>
    %cst_22 = arith.constant 0.000000e+00 : f32
    %28 = vector.broadcast %cst_22 : f32 to vector<1x3xf32>
    %29 = tpu.concatenate %28, %9, %28 in 1 : vector<1x3xf32>, vector<1x16xf32>, vector<1x3xf32> -> vector<1x22xf32>
    %c0_23 = arith.constant 0 : index
    %30 = memref.load %arg9[%c0_23] : memref<1xf32, #tpu.memory_space<smem>>
    %31 = vector.broadcast %30 : f32 to vector<1x16xf32>
    %c0_24 = arith.constant 0 : index
    %32 = memref.load %arg8[%c0_24] : memref<7xf32, #tpu.memory_space<smem>>
    %33 = vector.extract_strided_slice %29 {offsets = [0, 0], sizes = [1, 16], strides = [1, 1]} : vector<1x22xf32> to vector<1x16xf32>
    %34 = vector.broadcast %32 : f32 to vector<1x16xf32>
    %35 = arith.mulf %34, %33 : vector<1x16xf32>
    %36 = arith.addf %31, %35 : vector<1x16xf32>
    %c1 = arith.constant 1 : index
    %37 = memref.load %arg8[%c1] : memref<7xf32, #tpu.memory_space<smem>>
    %38 = vector.extract_strided_slice %29 {offsets = [0, 1], sizes = [1, 16], strides = [1, 1]} : vector<1x22xf32> to vector<1x16xf32>
    %39 = vector.broadcast %37 : f32 to vector<1x16xf32>
    %40 = arith.mulf %39, %38 : vector<1x16xf32>
    %41 = arith.addf %36, %40 : vector<1x16xf32>
    %c2 = arith.constant 2 : index
    %42 = memref.load %arg8[%c2] : memref<7xf32, #tpu.memory_space<smem>>
    %43 = vector.extract_strided_slice %29 {offsets = [0, 2], sizes = [1, 16], strides = [1, 1]} : vector<1x22xf32> to vector<1x16xf32>
    %44 = vector.broadcast %42 : f32 to vector<1x16xf32>
    %45 = arith.mulf %44, %43 : vector<1x16xf32>
    %46 = arith.addf %41, %45 : vector<1x16xf32>
    %c3 = arith.constant 3 : index
    %47 = memref.load %arg8[%c3] : memref<7xf32, #tpu.memory_space<smem>>
    %48 = vector.extract_strided_slice %29 {offsets = [0, 3], sizes = [1, 16], strides = [1, 1]} : vector<1x22xf32> to vector<1x16xf32>
    %49 = vector.broadcast %47 : f32 to vector<1x16xf32>
    %50 = arith.mulf %49, %48 : vector<1x16xf32>
    %51 = arith.addf %46, %50 : vector<1x16xf32>
    %c4 = arith.constant 4 : index
    %52 = memref.load %arg8[%c4] : memref<7xf32, #tpu.memory_space<smem>>
    %53 = vector.extract_strided_slice %29 {offsets = [0, 4], sizes = [1, 16], strides = [1, 1]} : vector<1x22xf32> to vector<1x16xf32>
    %54 = vector.broadcast %52 : f32 to vector<1x16xf32>
    %55 = arith.mulf %54, %53 : vector<1x16xf32>
    %56 = arith.addf %51, %55 : vector<1x16xf32>
    %c5 = arith.constant 5 : index
    %57 = memref.load %arg8[%c5] : memref<7xf32, #tpu.memory_space<smem>>
    %58 = vector.extract_strided_slice %29 {offsets = [0, 5], sizes = [1, 16], strides = [1, 1]} : vector<1x22xf32> to vector<1x16xf32>
    %59 = vector.broadcast %57 : f32 to vector<1x16xf32>
    %60 = arith.mulf %59, %58 : vector<1x16xf32>
    %61 = arith.addf %56, %60 : vector<1x16xf32>
    %c6 = arith.constant 6 : index
    %62 = memref.load %arg8[%c6] : memref<7xf32, #tpu.memory_space<smem>>
    %63 = vector.extract_strided_slice %29 {offsets = [0, 6], sizes = [1, 16], strides = [1, 1]} : vector<1x22xf32> to vector<1x16xf32>
    %64 = vector.broadcast %62 : f32 to vector<1x16xf32>
    %65 = arith.mulf %64, %63 : vector<1x16xf32>
    %66 = arith.addf %61, %65 : vector<1x16xf32>
    %cst_25 = arith.constant 5.000000e-01 : f32
    %67 = vector.broadcast %cst_25 : f32 to vector<1x16xf32>
    %68 = arith.mulf %67, %66 : vector<1x16xf32>
    %69 = math.tanh %68 : vector<1x16xf32>
    %cst_26 = arith.constant 1.000000e+00 : f32
    %70 = vector.broadcast %cst_26 : f32 to vector<1x16xf32>
    %71 = arith.addf %70, %69 : vector<1x16xf32>
    %cst_27 = arith.constant 5.000000e-01 : f32
    %72 = vector.broadcast %cst_27 : f32 to vector<1x16xf32>
    %73 = arith.mulf %72, %71 : vector<1x16xf32>
    %74 = tpu.concatenate %28, %10, %28 in 1 : vector<1x3xf32>, vector<1x16xf32>, vector<1x3xf32> -> vector<1x22xf32>
    %c0_28 = arith.constant 0 : index
    %75 = memref.load %arg11[%c0_28] : memref<1xf32, #tpu.memory_space<smem>>
    %76 = vector.broadcast %75 : f32 to vector<1x16xf32>
    %c0_29 = arith.constant 0 : index
    %77 = memref.load %arg10[%c0_29] : memref<7xf32, #tpu.memory_space<smem>>
    %78 = vector.extract_strided_slice %74 {offsets = [0, 0], sizes = [1, 16], strides = [1, 1]} : vector<1x22xf32> to vector<1x16xf32>
    %79 = vector.broadcast %77 : f32 to vector<1x16xf32>
    %80 = arith.mulf %79, %78 : vector<1x16xf32>
    %81 = arith.addf %76, %80 : vector<1x16xf32>
    %c1_30 = arith.constant 1 : index
    %82 = memref.load %arg10[%c1_30] : memref<7xf32, #tpu.memory_space<smem>>
    %83 = vector.extract_strided_slice %74 {offsets = [0, 1], sizes = [1, 16], strides = [1, 1]} : vector<1x22xf32> to vector<1x16xf32>
    %84 = vector.broadcast %82 : f32 to vector<1x16xf32>
    %85 = arith.mulf %84, %83 : vector<1x16xf32>
    %86 = arith.addf %81, %85 : vector<1x16xf32>
    %c2_31 = arith.constant 2 : index
    %87 = memref.load %arg10[%c2_31] : memref<7xf32, #tpu.memory_space<smem>>
    %88 = vector.extract_strided_slice %74 {offsets = [0, 2], sizes = [1, 16], strides = [1, 1]} : vector<1x22xf32> to vector<1x16xf32>
    %89 = vector.broadcast %87 : f32 to vector<1x16xf32>
    %90 = arith.mulf %89, %88 : vector<1x16xf32>
    %91 = arith.addf %86, %90 : vector<1x16xf32>
    %c3_32 = arith.constant 3 : index
    %92 = memref.load %arg10[%c3_32] : memref<7xf32, #tpu.memory_space<smem>>
    %93 = vector.extract_strided_slice %74 {offsets = [0, 3], sizes = [1, 16], strides = [1, 1]} : vector<1x22xf32> to vector<1x16xf32>
    %94 = vector.broadcast %92 : f32 to vector<1x16xf32>
    %95 = arith.mulf %94, %93 : vector<1x16xf32>
    %96 = arith.addf %91, %95 : vector<1x16xf32>
    %c4_33 = arith.constant 4 : index
    %97 = memref.load %arg10[%c4_33] : memref<7xf32, #tpu.memory_space<smem>>
    %98 = vector.extract_strided_slice %74 {offsets = [0, 4], sizes = [1, 16], strides = [1, 1]} : vector<1x22xf32> to vector<1x16xf32>
    %99 = vector.broadcast %97 : f32 to vector<1x16xf32>
    %100 = arith.mulf %99, %98 : vector<1x16xf32>
    %101 = arith.addf %96, %100 : vector<1x16xf32>
    %c5_34 = arith.constant 5 : index
    %102 = memref.load %arg10[%c5_34] : memref<7xf32, #tpu.memory_space<smem>>
    %103 = vector.extract_strided_slice %74 {offsets = [0, 5], sizes = [1, 16], strides = [1, 1]} : vector<1x22xf32> to vector<1x16xf32>
    %104 = vector.broadcast %102 : f32 to vector<1x16xf32>
    %105 = arith.mulf %104, %103 : vector<1x16xf32>
    %106 = arith.addf %101, %105 : vector<1x16xf32>
    %c6_35 = arith.constant 6 : index
    %107 = memref.load %arg10[%c6_35] : memref<7xf32, #tpu.memory_space<smem>>
    %108 = vector.extract_strided_slice %74 {offsets = [0, 6], sizes = [1, 16], strides = [1, 1]} : vector<1x22xf32> to vector<1x16xf32>
    %109 = vector.broadcast %107 : f32 to vector<1x16xf32>
    %110 = arith.mulf %109, %108 : vector<1x16xf32>
    %111 = arith.addf %106, %110 : vector<1x16xf32>
    %cst_36 = arith.constant 5.000000e-01 : f32
    %112 = vector.broadcast %cst_36 : f32 to vector<1x16xf32>
    %113 = arith.mulf %112, %111 : vector<1x16xf32>
    %114 = math.tanh %113 : vector<1x16xf32>
    %cst_37 = arith.constant 1.000000e+00 : f32
    %115 = vector.broadcast %cst_37 : f32 to vector<1x16xf32>
    %116 = arith.addf %115, %114 : vector<1x16xf32>
    %cst_38 = arith.constant 5.000000e-01 : f32
    %117 = vector.broadcast %cst_38 : f32 to vector<1x16xf32>
    %118 = arith.mulf %117, %116 : vector<1x16xf32>
    %c0_39 = arith.constant 0 : index
    %c0_40 = arith.constant 0 : index
    %119 = vector.load %arg7[%c0_39, %c0_40] : memref<32x256xf32, #tpu.memory_space<vmem>>, vector<32x256xf32>
    %120 = vector.extract_strided_slice %119 {offsets = [0, 0], sizes = [16, 256], strides = [1, 1]} : vector<32x256xf32> to vector<16x256xf32>
    %cst_41 = arith.constant dense<0.000000e+00> : vector<1x256xf32>
    %121 = tpu.matmul %73, %120, %cst_41 {dimension_numbers = #tpu.dot_dimension_numbers<[1], [0], [0], [1], [0, 0, 1, 1], [], []>} : vector<1x16xf32>, vector<16x256xf32>, vector<1x256xf32> -> vector<1x256xf32>
    %122 = vector.extract_strided_slice %119 {offsets = [16, 0], sizes = [16, 256], strides = [1, 1]} : vector<32x256xf32> to vector<16x256xf32>
    %cst_42 = arith.constant dense<0.000000e+00> : vector<1x256xf32>
    %123 = tpu.matmul %118, %122, %cst_42 {dimension_numbers = #tpu.dot_dimension_numbers<[1], [0], [0], [1], [0, 0, 1, 1], [], []>} : vector<1x16xf32>, vector<16x256xf32>, vector<1x256xf32> -> vector<1x256xf32>
    %124 = arith.mulf %121, %123 : vector<1x256xf32>
    %125 = vector.shape_cast %124 : vector<1x256xf32> to vector<1x1x256xf32>
    %126 = vector.broadcast %125 : vector<1x1x256xf32> to vector<1x32x256xf32>
    %127 = arith.mulf %0, %126 : vector<1x32x256xf32>
    %128 = vector.shape_cast %27 : vector<1x32xf32> to vector<1x32x1xf32>
    %129 = vector.broadcast %128 : vector<1x32x1xf32> to vector<1x32x256xf32>
    %130 = arith.mulf %127, %129 : vector<1x32x256xf32>
    %c0_43 = arith.constant 0 : index
    %c0_44 = arith.constant 0 : index
    %c0_45 = arith.constant 0 : index
    %131 = vector.load %arg12[%c0_43, %c0_44, %c0_45] : memref<1x32x256xf32, #tpu.memory_space<vmem>>, vector<1x32x256xf32>
    tpu.vector_store %arg12[%c0_43, %c0_44, %c0_45], %130 {strides = array<i32>} : memref<1x32x256xf32, #tpu.memory_space<vmem>>, vector<1x32x256xf32>,
    return
  }
  func.func @transform_0(%arg0: i32) -> (i32, i32, i32) {
    %c0_i32 = arith.constant 0 : i32
    %c0_i32_0 = arith.constant 0 : i32
    %c0_i32_1 = arith.constant 0 : i32
    return %arg0, %c0_i32, %c0_i32_0 : i32, i32, i32
  }
  func.func @transform_1(%arg0: i32) -> (i32, i32) {
    %c0_i32 = arith.constant 0 : i32
    %c0_i32_0 = arith.constant 0 : i32
    %c0_i32_1 = arith.constant 0 : i32
    return %c0_i32, %c0_i32_0 : i32, i32
  }
  func.func @transform_2(%arg0: i32) -> (i32, i32) {
    %c0_i32 = arith.constant 0 : i32
    %c0_i32_0 = arith.constant 0 : i32
    %c0_i32_1 = arith.constant 0 : i32
    return %c0_i32, %c0_i32_0 : i32, i32
  }
  func.func @transform_3(%arg0: i32) -> (i32, i32) {
    %c0_i32 = arith.constant 0 : i32
    %c0_i32_0 = arith.constant 0 : i32
    %c0_i32_1 = arith.constant 0 : i32
    return %c0_i32, %c0_i32_0 : i32, i32
  }
  func.func @transform_4(%arg0: i32) -> (i32, i32) {
    %c0_i32 = arith.constant 0 : i32
    %c0_i32_0 = arith.constant 0 : i32
    %c0_i32_1 = arith.constant 0 : i32
    return %c0_i32, %c0_i32_0 : i32, i32
  }
  func.func @transform_5(%arg0: i32) -> (i32, i32) {
    %c0_i32 = arith.constant 0 : i32
    %c0_i32_0 = arith.constant 0 : i32
    %c0_i32_1 = arith.constant 0 : i32
    return %c0_i32, %c0_i32_0 : i32, i32
  }
  func.func @transform_6(%arg0: i32) -> (i32, i32) {
    %c0_i32 = arith.constant 0 : i32
    %c0_i32_0 = arith.constant 0 : i32
    %c0_i32_1 = arith.constant 0 : i32
    return %c0_i32, %c0_i32_0 : i32, i32
  }
  func.func @transform_7(%arg0: i32) -> i32 {
    %c0_i32 = arith.constant 0 : i32
    %c0_i32_0 = arith.constant 0 : i32
    return %c0_i32 : i32
  }
  func.func @transform_8(%arg0: i32) -> i32 {
    %c0_i32 = arith.constant 0 : i32
    %c0_i32_0 = arith.constant 0 : i32
    return %c0_i32 : i32
  }
  func.func @transform_9(%arg0: i32) -> i32 {
    %c0_i32 = arith.constant 0 : i32
    %c0_i32_0 = arith.constant 0 : i32
    return %c0_i32 : i32
  }
  func.func @transform_10(%arg0: i32) -> i32 {
    %c0_i32 = arith.constant 0 : i32
    %c0_i32_0 = arith.constant 0 : i32
    return %c0_i32 : i32
  }
  func.func @transform_11(%arg0: i32) -> (i32, i32, i32) {
    %c0_i32 = arith.constant 0 : i32
    %c0_i32_0 = arith.constant 0 : i32
    %c0_i32_1 = arith.constant 0 : i32
    return %arg0, %c0_i32, %c0_i32_0 : i32, i32, i32
  }
}

</mosaic_0001>

<bundles_post_ra>
// kernel: tpu_custom_call.1
= control target key start
LH: loop header
LB: loop body
LE: loop exit
PB: predicated region body
PF: predicated region fallthrough
CT: control target
= control target key end

     0   :  { %s1968_s0 = inlined_call_operand.vmem [shape: f32[2,32,256], index: 0, kind: input, shape index: {}]   ;;  %s1969_s1 = inlined_call_operand.vmem [shape: f32[32,2], index: 1, kind: input, shape index: {}]   ;;  %s1970_s2 = inlined_call_operand.vmem [shape: f32[1,2], index: 2, kind: input, shape index: {}]   ;;  %s1971_s3 = inlined_call_operand.vmem [shape: f32[2,32], index: 3, kind: input, shape index: {}]   ;;  %s1972_s4 = inlined_call_operand.vmem [shape: f32[1,32], index: 4, kind: input, shape index: {}]   ;;  %s1973_s5 = inlined_call_operand.vmem [shape: f32[256,32], index: 5, kind: input, shape index: {}]   ;;  %s1974_s6 = inlined_call_operand.vmem [shape: f32[32,256], index: 6, kind: input, shape index: {}]   ;;  %s1975_s7 = inlined_call_operand.vmem [shape: f32[7], index: 7, kind: input, shape index: {}]   ;;  %s1976_s8 = inlined_call_operand.<no memory space> [shape: f32[1], index: 8, kind: input, shape index: {}]   ;;  %s1977_s9 = inlined_call_operand.vmem [shape: f32[7], index: 9, kind: input, shape index: {}]   ;;  %s1978_s10 = inlined_call_operand.<no memory space> [shape: f32[1], index: 10, kind: input, shape index: {}]   ;;  %s1979_s11 = inlined_call_operand.hbm [shape: f32[2,32,256], index: 11, kind: output, shape index: {}]  }
   0x1   :  { %1985 = sst [smem:[#allocation13_spill]] %s1968_s0 }
   0x2   :  { %16 = sst [smem:[#allocation2]] %s1976_s8 }
   0x3   :  { %17 = sst [smem:[#allocation3]] %s1978_s10 }
   0x4   :  { %18 = vsyncpa [#allocation6], 0 }
   0x5   :  { %19 = vsyncpa [#allocation8], 0 }
   0x6   :  { %20 = vsyncpa [#allocation5], 0 }
   0x7   :  { %22 = vsyncpa [#allocation5 + $0x1], 0  ;;  %s1593_s21 = smov 0   ;;  %s1595_s22 = smov 0  }
   0x8   :  { %s1597_s23 = smov 0   ;;  %s1599_s24 = smov 0  }
   0x9 LB: > { %s1614_s8 = sadd.s32 4294967295, %s1509_s24   ;;  %s1191_s10 = sadd.s32 4294967294, %s1509_s24   ;;  %s1509_s24 = sphi %s1599_s24, %s2003_s24   ;;  %s1505_s23 = sphi %s1597_s23, %s2002_s23   ;;  %s1501_s22 = sphi %s1595_s22, %s2001_s22   ;;  %s1497_s21 = sphi %s1593_s21, %s2000_s21  }
   0xa   : > { %s1618_s25 = sadd.s32 1, %s1509_s24   ;;  %s271_s26 = sadd.s32 1, %s1505_s23 }
   0xb   : > { %s268_s27 = ssub.s32 %s1509_s24, %s1618_s25  ;;  %p281_p0 = scmp.ne.s32.totalorder %s1505_s23, %s1501_s22 }
   0xc   : > { %p269_p1 = scmp.eq.s32.totalorder %s268_s27, 0  ;;  %p282_p2 = scmp.eq.s32.totalorder %s1614_s8, 1 }
   0xd   : > { %p287_p3 = scmp.ne.s32.totalorder %s1501_s22, %s1497_s21  ;;  %p288_p4 = scmp.eq.s32.totalorder %s1191_s10, 1 }
   0xe   : > { %s1629_s28 = scalar_select %p269_p1, %s1505_s23, %s271_s26  }
   0xf   : > { %p1631_p5 = por %p282_p2, %p281_p0  ;;  %p1635_p6 = por %p288_p4, %p287_p3 }
  0x10   : > { %p1192_p7 = scmp.ge.s32.totalorder %s1509_s24, 1  ;;  %p295_p8 = scmp.lt.s32.totalorder %s1509_s24, 3 }
  0x11   : > { %s1986_s29 = scalar_select %p1631_p5, 1, 0 }
  0x12   : > { %s1987_s30 = scalar_select %p1635_p6, 1, 0 }
  0x13   : > { %p1980_p9 = scmp.eq.s32.totalorder %s1614_s8, 0  ;;  %p1642_p10 = pnand %p1192_p7, %p295_p8 }
  0x14   : > { %s326_s15 = sshll.u32 %s1975_s7, 4  ;;  %s340_s18 = sshll.u32 %s1977_s9, 4  ;;  %s327_s15 = int_to_ptr.vmem [resolvable:$true] %s326_s15  ;;  %s341_s18 = int_to_ptr.vmem [resolvable:$true] %s340_s18 }
  0x15   : > { %s1988_s12 = scalar_select %p1642_p10, 1, 0 }
  0x16   : > { %p1340_p11 = pneg %p1642_p10  ;;  %s1409_s20 = scalar_lea.vmem %s327_s15, 16 }
  0x17   : > { %p1410_p13 = scmp.ne.s32.totalorder %s327_s15, %s1409_s20  ;;  %p1417_p3 = scmp.lt.s32.totalorder %s327_s15, %s327_s15 }
  0x18   : > { %p1656_p12 = pnand %p1980_p9, %p1340_p11  ;;  %p1418_p4 = scmp.lt.s32.totalorder %s1409_s20, %s1409_s20 }
  0x1a   : > { %p1411_p0 = pneg %p1656_p12  ;;  %p1419_p7 = por %p1418_p4, %p1417_p3 }
  0x1c   : > { %p1412_p1 = pnand %p1411_p0, %p1410_p13 }
  0x1e   : > { %p1413_p2 = pneg %p1412_p1 }
  0x20   : > { %p1420_p8 = pnand %p1419_p7, %p1413_p2 }
  0x22   : > { %1423 = shalt.err (!%p1420_p8)
}
  0x23   : > { %s1511_s10 = smov [#allocation4]   ;;  %s1424_s26 = scalar_lea.vmem %s341_s18, 16 }
  0x24   : > { %1343 = dma.vmem_to_smem (!%p1656_p12), %s327_s15, 16, %s1511_s10, [#allocation6]  }
  0x25   : > { %p1425_p11 = scmp.ne.s32.totalorder %s341_s18, %s1424_s26  ;;  %p1432_p5 = scmp.lt.s32.totalorder %s341_s18, %s341_s18 }
  0x26   : > { %p1433_p10 = scmp.lt.s32.totalorder %s1424_s26, %s1424_s26 }
  0x27   : > { %p1427_p9 = pnand %p1425_p11, %p1411_p0 }
  0x28   : > { %p1434_p13 = por %p1433_p10, %p1432_p5 }
  0x29   : > { %p1428_p6 = pneg %p1427_p9 }
  0x2b   : > { %p1435_p1 = pnand %p1434_p13, %p1428_p6 }
  0x2d   : > { %1438 = shalt.err (!%p1435_p1)
}
  0x2e   : > { %s1512_s27 = smov [#allocation7]   ;;  %p1990_p2 = scmp.ne.s32.totalorder %s1988_s12, 0 }
  0x2f   : > { %1346 = dma.vmem_to_smem (!%p1656_p12), %s341_s18, 16, %s1512_s27, [#allocation8]  }
  0x30   : > { %364 = sbr.rel (%p1990_p2) target bundleno = 827 (0x33b), region = 64  ;;  %p1991_p3 = scmp.eq.s32.totalorder (!%p1990_p2), %s1614_s8, 0 }
  0x37   : > { %1484 = dma.done.wait (%p1991_p3), [#allocation6], 16   ;;  %p1992_p4 = pmov %p1991_p3 }
  0x38   : > { %p1993_p9 = pmov %p1991_p3 }
  0x39   : > { %1486 = vsyncadd (%p1992_p4), [#allocation6], 4294967280 }
  0x3a   : > { %1488 = dma.done.wait (%p1993_p9), [#allocation8], 16   ;;  %p1994_p5 = pmov %p1991_p3 }
  0x3c   : > { %1490 = vsyncadd (%p1994_p5), [#allocation8], 4294967280 }
  0x3d   : > { %374 = sfence }
  0x3e   : > { %v474_v0 = vld [vmem:[%s1973_s5 + $0x80] sm:$0xff]  ;;  %v475_v1 = vld [vmem:[%s1973_s5 + $0x88] sm:$0xff]  ;;  %p409_p6 = scmp.lt.s32.totalorder %s1614_s8, 1  ;;  %v476_v5 = vld [vmem:[%s1973_s5 + $0x90] sm:$0xff]  ;;  %s1995_s0 = sld [smem:[#allocation13_spill]]  ;;  %vm1514_vm0 = vmmov 0  }
  0x3f   : > { %v458_v2 = vld [vmem:[%s1973_s5] sm:$0xff]  ;;  %v1284_v3 = vpack.c.bf16 %v475_v1, %v474_v0  ;;  %v459_v4 = vld [vmem:[%s1973_s5 + $0x8] sm:$0xff]  ;;  %v477_v6 = vld [vmem:[%s1973_s5 + $0x98] sm:$0xff]  ;;  %vm580_vm1 = vcmask 130112   ;;  %vm587_vm2 = vcmask 195712   ;;  %vm594_vm3 = vcmask 261312  }
  0x40   : > { %v1286_v7 = vpack.c.bf16 %v459_v4, %v458_v2  ;;  %v1288_v8 = vpack.c.bf16 %v477_v6, %v476_v5  ;;  %v460_v9 = vld [vmem:[%s1973_s5 + $0x10] sm:$0xff]  ;;  %v461_v10 = vld [vmem:[%s1973_s5 + $0x18] sm:$0xff]  ;;  %v478_v11 = vld [vmem:[%s1973_s5 + $0xa0] sm:$0xff]  ;;  %s410_s18 = scalar_select %p409_p6, %s1614_s8, 1  ;;  %vm596_vm4 = vcmask 261120   ;;  %vm676_vm5 = vcmask 1041408  }
  0x41   : > { %1285 = vmatprep.subr.bf16.mxu0 %v1284_v3  ;;  %v479_v12 = vld [vmem:[%s1973_s5 + $0xa8] sm:$0xff]  ;;  %v1290_v13 = vpack.c.bf16 %v461_v10, %v460_v9  ;;  %v462_v14 = vld [vmem:[%s1973_s5 + $0x20] sm:$0xff]  ;;  %v480_v17 = vld [vmem:[%s1973_s5 + $0xb0] sm:$0xff]  ;;  %s1516_s17 = smov 115   ;;  %s1517_s19 = smov 3   ;;  %vm758_vm6 = vcmask 23552  }
  0x42   : > { %1287 = vmatpush3.bf16.msra.mxu0 %v1286_v7  ;;  %s1224_s27 = sshll.u32 %s410_s18, 6  ;;  %v1292_v15 = vpack.c.bf16 %v479_v12, %v478_v11  ;;  %v463_v16 = vld [vmem:[%s1973_s5 + $0x28] sm:$0xff]  ;;  %v481_v18 = vld [vmem:[%s1973_s5 + $0xb8] sm:$0xff]  ;;  %v464_v26 = vld [vmem:[%s1973_s5 + $0x30] sm:$0xff]  ;;  %s1207_s18 = sld [smem:[#allocation4 + $0x3]]  ;;  %vm760_vm7 = vcmask 154624  }
  0x43   : > { %1289 = vmatprep.subr.bf16.mxu0 %v1288_v8  ;;  %v1294_v24 = vpack.c.bf16 %v463_v16, %v462_v14  ;;  %v1296_v25 = vpack.c.bf16 %v481_v18, %v480_v17  ;;  %v465_v30 = vld [vmem:[%s1973_s5 + $0x38] sm:$0xff]  ;;  %v482_v36 = vld [vmem:[%s1973_s5 + $0xc0] sm:$0xff]  ;;  %v483_v37 = vld [vmem:[%s1973_s5 + $0xc8] sm:$0xff]  ;;  %v1513_v14 = vmov 0.0|0.0   ;;  %s1205_s26 = sld [smem:[#allocation4 + $0x1]]  ;;  %s1206_s13 = sld [smem:[#allocation4 + $0x2]] }
  0x44   : > { %s413_s10 = scalar_lea.vmem %s1995_s0, %s1224_s27  ;;  %v1298_v41 = vpack.c.bf16 %v465_v30, %v464_v26  ;;  %v1300_v42 = vpack.c.bf16 %v483_v37, %v482_v36  ;;  %v466_v43 = vld [vmem:[%s1973_s5 + $0x40] sm:$0xff]  ;;  %v467_v44 = vld [vmem:[%s1973_s5 + $0x48] sm:$0xff]  ;;  %v484_v47 = vld [vmem:[%s1973_s5 + $0xd0] sm:$0xff]  ;;  %1316 = vmatprep.subr.bf16.mxu1 %v1513_v14  ;;  %v1515_v26 = vmov 0.0   ;;  %v569_v30 = vlaneseq  ;;  %s1208_s27 = sld [smem:[#allocation4 + $0x4]] }
  0x45   : > { %v1723_v19 = vld [vmem:[%s413_s10] sm:$0xff]  ;;  %v1725_v20 = vld [vmem:[%s413_s10 + $0x8] sm:$0xff]  ;;  %v1738_v28 = vld [vmem:[%s413_s10 + $0x10] sm:$0xff]  ;;  %v1302_v51 = vpack.c.bf16 %v467_v44, %v466_v43  ;;  %1276 = vmatprep.mubr.msk.f32.mxu1 %vm1514_vm0, %v1515_v26  ;;  %s1835_s14 = sld [smem:[#allocation4 + $0x5]]  ;;  %s1837_s12 = sld [smem:[#allocation7 + $0x1]]  ;;  %vm672_vm8 = vcmask 15360  }
  0x46   : > { %v1727_v21 = vld [vmem:[%s413_s10 + $0x20] sm:$0xff]  ;;  %v422_v22 = vadd.f32 %v1725_v20, %v1723_v19  ;;  %v1731_v23 = vld [vmem:[%s413_s10 + $0x28] sm:$0xff]  ;;  %1291 = vmatpush3.bf16.msra.mxu0 %v1290_v13  ;;  %v1740_v29 = vld [vmem:[%s413_s10 + $0x18] sm:$0xff]  ;;  %v438_v32 = vadd.f32 %v1738_v28, %v1723_v19  ;;  %s1845_s15 = sld [smem:[#allocation4 + $0x6]]  ;;  %s1847_s16 = sld [smem:[#allocation7 + $0x2]]  ;;  %vm891_vm9 = vcmask 130048  }
  0x47   : > { %v428_v27 = vadd.f32 %v1731_v23, %v1727_v21  ;;  %1293 = vmatprep.subr.bf16.mxu0 %v1292_v15  ;;  %v425_v31 = vadd.f32 %v1740_v29, %v1738_v28  ;;  %v447_v33 = vadd.f32 %v1740_v29, %v1725_v20  ;;  %v1751_v34 = vld [vmem:[%s413_s10 + $0x30] sm:$0xff]  ;;  %v1753_v35 = vld [vmem:[%s413_s10 + $0x38] sm:$0xff]  ;;  %v486_v57 = vld [vmem:[%s1973_s5 + $0xe0] sm:$0xff]  ;;  %s1216_s20 = sld [smem:[#allocation7 + $0x6]]  ;;  %s1523_s10 = smov 122  }
  0x48   : > { %423 = vadd.xlane.f32.xlu0 %v422_v22  ;;  %v431_v38 = vadd.f32 %v1753_v35, %v1751_v34  ;;  %v439_v39 = vadd.f32 %v438_v32, %v1727_v21  ;;  %v485_v48 = vld [vmem:[%s1973_s5 + $0xd8] sm:$0xff]  ;;  %v468_v54 = vld [vmem:[%s1973_s5 + $0x50] sm:$0xff]  ;;  %v487_v58 = vld [vmem:[%s1973_s5 + $0xe8] sm:$0xff]  ;;  %v1824_v32 = vshrl.u32 %v569_v30, 7  ;;  %s1996_s0 = smov 125   ;;  %p1998_p12 = scmp.ne.s32.totalorder %s1986_s29, 0 }
  0x49   : > { %429 = vadd.xlane.f32.xlu1 %v428_v27  ;;  %v448_v40 = vadd.f32 %v447_v33, %v1731_v23  ;;  %v1304_v52 = vpack.c.bf16 %v485_v48, %v484_v47  ;;  %v469_v55 = vld [vmem:[%s1973_s5 + $0x58] sm:$0xff]  ;;  %v1308_v62 = vpack.c.bf16 %v487_v58, %v486_v57  ;;  %v470_v63 = vld [vmem:[%s1973_s5 + $0x60] sm:$0xff]  ;;  %v471_v0 = vld [vmem:[%s1973_s5 + $0x68] sm:$0xff] }
  0x4a   : > { %1295 = vmatpush3.bf16.msra.mxu0 %v1294_v24  ;;  %v440_v45 = vadd.f32 %v439_v39, %v1751_v34  ;;  %v1306_v61 = vpack.c.bf16 %v469_v55, %v468_v54  ;;  %v488_v3 = vld [vmem:[%s1973_s5 + $0xf0] sm:$0xff]  ;;  %v489_v4 = vld [vmem:[%s1973_s5 + $0xf8] sm:$0xff]  ;;  %v1310_v7 = vpack.c.bf16 %v471_v0, %v470_v63  ;;  %v560_v17 = vld [vmem:[%s1969_s1] sm:$0xff]  ;;  %v769_v63 = vstv %s1205_s26  ;;  %s1213_s26 = sld [smem:[#allocation7 + $0x3]] }
  0x4b   : > { %1297 = vmatprep.subr.bf16.mxu0 %v1296_v25  ;;  %v449_v46 = vadd.f32 %v448_v40, %v1753_v35  ;;  %v1312_v8 = vpack.c.bf16 %v489_v4, %v488_v3  ;;  %v472_v9 = vld [vmem:[%s1973_s5 + $0x70] sm:$0xff]  ;;  %v473_v10 = vld [vmem:[%s1973_s5 + $0x78] sm:$0xff]  ;;  %v561_v18 = vld [vmem:[%s1969_s1 + $0x8] sm:$0xff] }
  0x4c   : > { %426 = vadd.xlane.f32.xlu0 %v425_v31  ;;  %v441_v49 = vrot.slane %v440_v45, 4  ;;  %v1314_v15 = vpack.c.bf16 %v473_v10, %v472_v9  ;;  %v562_v22 = vld [vmem:[%s1969_s1 + $0x10] sm:$0xff]  ;;  %v1317_v24 = vpack.c.bf16 %v561_v18, %v560_v17  ;;  %v563_v25 = vld [vmem:[%s1969_s1 + $0x18] sm:$0xff]  ;;  %v570_v31 = vand.u32 127, %v569_v30  ;;  %v564_v10 = vld [vmem:[%s1970_s2] sm:$0x1] }
  0x4d   : > { %432 = vadd.xlane.f32.xlu1 %v431_v38  ;;  %v450_v50 = vrot.slane %v449_v46, 4  ;;  %v1320_v27 = vpack.c.bf16 %v563_v25, %v562_v22  ;;  %v840_v25 = vstv %s1847_s16  ;;  %s1225_s16 = sshll.u32 %s1614_s8, 10 }
  0x4e   : > { %1299 = vmatpush3.bf16.msra.mxu0 %v1298_v41  ;;  %v442_v53 = vadd.f32 %v441_v49, %v440_v45  ;;  %1318 = vmatpush3.bf16.msra.mxu1 %v1317_v24  ;;  %v582_v33 = vadd.s32 4294967280, %v570_v31  ;;  %v575_v36 = vadd.s32 4294967288, %v570_v31  ;;  %v589_v38 = vadd.s32 4294967272, %v570_v31 }
  0x4f   : > { %1301 = vmatprep.subr.bf16.mxu0 %v1300_v42  ;;  %v451_v56 = vadd.f32 %v450_v50, %v449_v46  ;;  %1319 = vmatprep.subr.bf16.mxu1 %v1513_v14  ;;  %v573_v39 = vsub.s32 %v570_v31, %v1824_v32  ;;  %v809_v24 = vstv %s1845_s15  ;;  %s406_s15 = sand.u32 1, %s1501_s22  }
  0x50   : > { %v443_v60 = vrot.slane %v442_v53, 2  ;;  %v585_v42 = vsub.s32 %v582_v33, %v1824_v32  ;;  %v578_v44 = vsub.s32 %v575_v36, %v1824_v32  ;;  %v592_v46 = vsub.s32 %v589_v38, %v1824_v32  ;;  %v884_v38 = vld [vmem:[%s1974_s6 + $0x8] sm:$0xff] }
  0x51   : > { %v452_v59 = vrot.slane %v451_v56, 2  ;;  %v848_v33 = vstv %s1213_s26  ;;  %s1524_s26 = smov [#allocation9]  }
  0x52   : > { %1303 = vmatpush3.bf16.msra.mxu0 %v1302_v51  ;;  %v444_v2 = vadd.f32 %v443_v60, %v442_v53  ;;  %1321 = vmatpush3.bf16.msra.mxu1 %v1320_v27  ;;  %v670_v60 = vld [vmem:[%s1971_s3] sm:$0x3] }
  0x53   : > { %1305 = vmatprep.subr.bf16.mxu0 %v1304_v52  ;;  %v453_v1 = vadd.f32 %v452_v59, %v451_v56  ;;  %1279 = vmatprep.subr.mxu1 %v1515_v26 }
  0x54   : > { %v445_v6 = vrot.slane %v444_v2, 1 }
  0x55   : > { %v454_v5 = vrot.slane %v453_v1, 1 }
  0x56   : > { %1307 = vmatpush3.bf16.msra.mxu0 %v1306_v61  ;;  %v446_v13 = vadd.f32 %v445_v6, %v444_v2  ;;  %v777_v6 = vstv %s1206_s13  ;;  %s1521_s13 = smov 126  }
  0x57   : > { %1309 = vmatprep.subr.bf16.mxu0 %v1308_v62  ;;  %v455_v11 = vadd.f32 %v454_v5, %v453_v1  ;;  %v785_v62 = vstv %s1207_s18  ;;  %v793_v5 = vstv %s1208_s27  ;;  %s1215_s18 = sld [smem:[#allocation7 + $0x5]]  ;;  %s1983_s27 = smov 124  }
  0x58   : > { %v456_v16 = vmul.f32 0.03125, %v446_v13  ;;  %v832_v13 = vstv %s1837_s12  ;;  %s1522_s12 = smov 123  }
  0x59   : > { %v457_v12 = vmul.f32 0.03125, %v455_v11 }
  0x5a   : > { %1311 = vmatpush3.bf16.msra.mxu0 %v1310_v7 }
  0x5b   : > { %1313 = vmatprep.subr.bf16.mxu0 %v1312_v8  ;;  %554 = vmatprep.mubr.f32.mxu0 %v457_v12  ;;  %v801_v12 = vstv %s1835_s14  ;;  %s1214_s14 = sld [smem:[#allocation7 + $0x4]] }
  0x5d   : > { %v864_v31 = vstv %s1215_s18 }
  0x5e   : > { %1315 = vmatpush3.bf16.msra.mxu0 %v1314_v15 }
  0x61   : > { %555 = vmatmul.mubr.f32.vlgmr.msra.gmra.mrb[0].mxu0 %v456_v16 }
  0xd5   : > { %v424_v37 = vpop.xlane.xlu0 %423 }
  0xd6   : > { %v434_v40 = vmul.f32 0.00390625, %v424_v37  ;;  %v430_v41 = vpop.xlane.xlu1 %429 }
  0xd7   : > { %v436_v43 = vmul.f32 0.00390625, %v430_v41 }
  0xd8   : > { %v574_v47 = vrot.slane %v434_v40, %v573_v39  ;;  %v886_v39 = vld [vmem:[%s1974_s6 + $0x18] sm:$0xff]  ;;  %v856_v40 = vstv %s1214_s14 }
  0xd9   : > { %v427_v45 = vpop.xlane.xlu0 %426  ;;  %v586_v50 = vrot.slane %v436_v43, %v585_v42  ;;  %v1322_v41 = vpack.c.bf16 %v886_v39, %v884_v38  ;;  %v883_v42 = vld [vmem:[%s1974_s6] sm:$0xff]  ;;  %v885_v43 = vld [vmem:[%s1974_s6 + $0x10] sm:$0xff] }
  0xda   : > { %v435_v48 = vmul.f32 0.00390625, %v427_v45  ;;  %v433_v49 = vpop.xlane.xlu1 %432 }
  0xdb   : > { %v437_v51 = vmul.f32 0.00390625, %v433_v49  ;;  %v890_v49 = vld [vmem:[%s1974_s6 + $0x38] sm:$0xff] }
  0xdc   : > { %v579_v52 = vrot.slane %v435_v48, %v578_v44  ;;  %v1324_v44 = vpack.c.bf16 %v885_v43, %v883_v42  ;;  %v888_v48 = vld [vmem:[%s1974_s6 + $0x28] sm:$0xff] }
  0xdd   : > { %v593_v53 = vrot.slane %v437_v51, %v592_v46  ;;  %v872_v46 = vstv %s1216_s20  ;;  %s827_s20 = sld [smem:[#allocation7]] }
  0xde   : > { %v581_v54 = vsel %vm580_vm1, %v579_v52, %v574_v47 }
  0xdf   : > { %v588_v55 = vsel %vm587_vm2, %v586_v50, %v581_v54  ;;  %v1326_v50 = vpack.c.bf16 %v890_v49, %v888_v48 }
  0xe0   : > { %v595_v56 = vsel %vm594_vm3, %v593_v53, %v588_v55 }
  0xe1   : > { %1277 = vmatmul.mubr.msk.f32.vlgmr.msra.gmra.mrb[0].mxu1 %vm596_vm4, %v595_v56 }
  0xe2   : > { %1281 = vmatprep.mubr.msk.f32.mxu1 %vm1514_vm0, %v1515_v26  ;;  %1280 = vmatpush3.msk.msra.mxu1 %vm676_vm5, %v670_v60 }
  0xe3   : > { %1323 = vmatprep.subr.bf16.mxu1 %v1322_v41 }
 0x134   : > { %v1258_v57 = vpop.f32.mrb[0].mxu0 }
 0x135   : > { %v1259_v58 = vpop.f32.mrb[1].mxu0 }
 0x136   : > { %v1260_v59 = vadd.f32 %v1259_v58, %v1258_v57 }
 0x138   : > { %820 = vrot.lane.b32.xlu1 %v1260_v59, %s1516_s17  ;;  %755 = vrot.lane.b32.xlu0 %v1260_v59, %s1517_s19  ;;  %s1984_s17 = smov 125   ;;  %s1519_s19 = smov 127  }
 0x1aa   : > { %v756_v61 = vpop.permute.xlu0 %755  ;;  %v821_v1 = vpop.permute.xlu1 %820 }
 0x1ab   : > { %v759_v0 = vsel %vm758_vm6, 0.0, %v756_v61  ;;  %v823_v7 = vsel %vm758_vm6, 0.0, %v821_v1  ;;  %v828_v61 = vstv %s827_s20 }
 0x1ac   : > { %v1841_v2 = vsel %vm760_vm7, %v759_v0, 0.0  ;;  %v1857_v11 = vsel %vm760_vm7, %v823_v7, 0.0 }
 0x1ad   : > { %v786_v3 = vmul.f32 %v785_v62, %v1841_v2  ;;  %v770_v4 = vmul.f32 %v769_v63, %v1841_v2  ;;  %v794_v8 = vmul.f32 %v793_v5, %v1841_v2  ;;  %v778_v9 = vmul.f32 %v777_v6, %v1841_v2 }
 0x1ae   : > { %v802_v17 = vmul.f32 %v801_v12, %v1841_v2  ;;  %v833_v18 = vmul.f32 %v832_v13, %v1857_v11  ;;  %v810_v27 = vmul.f32 %v809_v24, %v1841_v2  ;;  %v841_v30 = vmul.f32 %v840_v25, %v1857_v11  ;;  %v889_v25 = vld [vmem:[%s1974_s6 + $0x30] sm:$0xff] }
 0x1af   : > { %788 = vrot.lane.b32.xlu0 %v786_v3, %s1984_s17  ;;  %772 = vrot.lane.b32.xlu1 %v770_v4, %s1519_s19  ;;  %v865_v36 = vmul.f32 %v864_v31, %v1857_v11  ;;  %v849_v37 = vmul.f32 %v848_v33, %v1857_v11  ;;  %v857_v45 = vmul.f32 %v856_v40, %v1857_v11  ;;  %v671_v40 = vld [vmem:[%s1972_s4] sm:$0x1]  ;;  %s1199_s17 = sshll.u32 %s406_s15, 6 }
 0x1b0   : > { %v873_v47 = vmul.f32 %v872_v46, %v1857_v11  ;;  %v829_v3 = vmul.f32 %v828_v61, %v1857_v11  ;;  %v887_v11 = vld [vmem:[%s1974_s6 + $0x20] sm:$0xff] }
 0x1b1   : > { %v1328_v33 = vpack.c.bf16 %v889_v25, %v887_v11 }
 0x1b3   : > { %796 = vrot.lane.b32.xlu0 %v794_v8, %s1983_s27  ;;  %780 = vrot.lane.b32.xlu1 %v778_v9, %s1521_s13  ;;  %s1997_s27 = smov 124  }
 0x1b4   : > { %v665_v14 = vpop.f32.mrb[0].mxu1 }
 0x1b5   : > { %v666_v15 = vadd.f32 %v665_v14, %v564_v10  ;;  %v1278_v16 = vpop.f32.mrb[1].mxu1 }
 0x1b7   : > { %v669_v22 = vmax.f32 %v666_v15, 0.0  ;;  %804 = vrot.lane.b32.xlu0 %v802_v17, %s1522_s12  ;;  %835 = vrot.lane.b32.xlu1 %v833_v18, %s1519_s19  ;;  %s1927_s19 = scalar_lea.sflag [#allocation5], %s406_s15 }
 0x1b9   : > { %1282 = vmatmul.mubr.msk.f32.vlgmr.msra.gmra.mrb[2].mxu1 %vm672_vm8, %v669_v22 }
 0x1ba   : > { %959 = vmatprep.mubr.f32.mxu1 %v1515_v26  ;;  %1325 = vmatpush1.bf16.msra.mxu1 %v1324_v44 }
 0x1bb   : > { %812 = vrot.lane.b32.xlu0 %v810_v27, %s1523_s10  ;;  %843 = vrot.lane.b32.xlu1 %v841_v30, %s1521_s13  ;;  %s1443_s13 = sshll.u32 %s1524_s26, 4  ;;  %s1444_s13 = int_to_ptr.vmem [resolvable:$false] %s1443_s13 }
 0x1bc   : > { %1327 = vmatprep.subr.bf16.mxu1 %v1326_v50 }
 0x1bf   : > { %867 = vrot.lane.b32.xlu0 %v865_v36, %s1522_s12  ;;  %851 = vrot.lane.b32.xlu1 %v849_v37, %s1996_s0  ;;  %s764_s0 = sld [smem:[#allocation4]]  ;;  %s762_s12 = sld [smem:[#allocation2]] }
 0x1c3   : > { %859 = vrot.lane.b32.xlu1 %v857_v45, %s1997_s27  ;;  %s1445_s27 = scalar_lea.vmem %s1444_s13, 2048 }
 0x1c5   : > { %v765_v51 = vstv %s764_s0  ;;  %v763_v53 = vstv %s762_s12  ;;  %s408_s0 = scalar_lea.vmem [#allocation9], %s1199_s17 }
 0x1c6   : > { %v766_v52 = vmul.f32 %v765_v51, %v1841_v2  ;;  %s1107_s12 = sshll.u32 %s408_s0, 4  ;;  %s1923_s12 = int_to_ptr.vmem [resolvable:$true] %s1107_s12 }
 0x1c7   : > { %875 = vrot.lane.b32.xlu1 %v873_v47, %s1523_s10  ;;  %s825_s10 = sld [smem:[#allocation3]]  ;;  %v1044_v47 = vsub.s32 0, %v1824_v32  ;;  %s1439_s18 = scalar_lea.vmem %s1923_s12, 1024 }
 0x1c8   : > { %v767_v56 = vadd.f32 %v766_v52, %v763_v53  ;;  %p1440_p10 = scmp.ne.s32.totalorder %s1923_s12, %s1439_s18  ;;  %p1446_p8 = scmp.lt.s32.totalorder %s1923_s12, %s1444_s13 }
 0x1c9   : > { %p1447_p11 = scmp.lt.s32.totalorder %s1445_s27, %s1439_s18 }
 0x1ca   : > { %p1441_p0 = pnand %p1440_p10, %p1998_p12 }
 0x1cb   : > { %p1448_p13 = por %p1447_p11, %p1446_p8 }
 0x1cc   : > { %p1442_p7 = pneg %p1441_p0 }
 0x1cd   : > { %v826_v4 = vstv %s825_s10  ;;  %s1921_s10 = scalar_lea.hbm %s1979_s11, %s1225_s16 }
 0x1ce   : > { %v830_v7 = vadd.f32 %v829_v3, %v826_v4  ;;  %p1449_p1 = pnand %p1448_p13, %p1442_p7 }
 0x221   : > { %v789_v54 = vpop.permute.xlu0 %788  ;;  %v773_v55 = vpop.permute.xlu1 %772 }
 0x222   : > { %v775_v57 = vadd.f32 %v773_v55, %v767_v56 }
 0x225   : > { %v797_v58 = vpop.permute.xlu0 %796  ;;  %v781_v59 = vpop.permute.xlu1 %780 }
 0x226   : > { %v783_v60 = vadd.f32 %v781_v59, %v775_v57 }
 0x228   : > { %v791_v62 = vadd.f32 %v789_v54, %v783_v60 }
 0x229   : > { %v805_v63 = vpop.permute.xlu0 %804  ;;  %v836_v0 = vpop.permute.xlu1 %835 }
 0x22a   : > { %v799_v1 = vadd.f32 %v797_v58, %v791_v62  ;;  %v838_v9 = vadd.f32 %v836_v0, %v830_v7 }
 0x22c   : > { %v807_v5 = vadd.f32 %v805_v63, %v799_v1 }
 0x22d   : > { %v813_v2 = vpop.permute.xlu0 %812  ;;  %v844_v6 = vpop.permute.xlu1 %843 }
 0x22e   : > { %v815_v8 = vadd.f32 %v813_v2, %v807_v5  ;;  %v846_v13 = vadd.f32 %v844_v6, %v838_v9 }
 0x230   : > { %v816_v10 = vmul.f32 0.5, %v815_v8 }
 0x231   : > { %v852_v12 = vpop.permute.xlu1 %851  ;;  %v868_v17 = vpop.permute.xlu0 %867 }
 0x232   : > { %1403 = vtanh.f32 %v816_v10  ;;  %v854_v14 = vadd.f32 %v852_v12, %v846_v13 }
 0x235   : > { %v860_v15 = vpop.permute.xlu1 %859 }
 0x236   : > { %v862_v16 = vadd.f32 %v860_v15, %v854_v14 }
 0x238   : > { %v870_v18 = vadd.f32 %v868_v17, %v862_v16 }
 0x239   : > { %v876_v22 = vpop.permute.xlu1 %875 }
 0x23a   : > { %v878_v24 = vadd.f32 %v876_v22, %v870_v18 }
 0x23c   : > { %v1404_v27 = vpop.eup %1403  ;;  %v879_v30 = vmul.f32 0.5, %v878_v24 }
 0x23d   : > { %v818_v31 = vadd.f32 1.0, %v1404_v27 }
 0x23e   : > { %1405 = vtanh.f32 %v879_v30 }
 0x23f   : > { %v819_v36 = vmul.f32 0.5, %v818_v31 }
 0x241   : > { %1217 = vmatmul.mubr.msk.f32.vlgmr.msra.gmra.mrb[4].mxu1 %vm891_vm9, %v819_v36 }
 0x242   : > { %1329 = vmatpush1.bf16.msra.mxu1 %v1328_v33  ;;  %1033 = vmatprep.mubr.f32.mxu1 %v1515_v26 }
 0x248   : > { %v1406_v37 = vpop.eup %1405 }
 0x249   : > { %v881_v38 = vadd.f32 1.0, %v1406_v37 }
 0x24b   : > { %v882_v39 = vmul.f32 0.5, %v881_v38 }
 0x24d   : > { %1218 = vmatmul.mubr.msk.f32.vlgmr.msra.gmra.mrb[6].mxu1 %vm891_vm9, %v882_v39 }
 0x28c   : > { %v746_v41 = vpop.f32.mrb[2].mxu1 }
 0x28d   : > { %v747_v42 = vadd.f32 %v746_v41, %v671_v40  ;;  %v1283_v43 = vpop.f32.mrb[3].mxu1 }
 0x28f   : > { %v750_v44 = vmul.f32 0.5, %v747_v42 }
 0x291   : > { %1407 = vtanh.f32 %v750_v44 }
 0x29b   : > { %v1408_v45 = vpop.eup %1407 }
 0x29c   : > { %v752_v46 = vadd.f32 1.0, %v1408_v45 }
 0x29e   : > { %v753_v26 = vmul.f32 0.5, %v752_v46 }
 0x2a0   : > { %v1061_v48 = vrot.slane %v753_v26, %v1044_v47 }
 0x2a2   : > { %1063 = vbcast.lane.b32.xlu0 %v1061_v48, 256  ;;  %1067 = vbcast.lane.b32.xlu1 %v1061_v48, 264 }
 0x2a6   : > { %1071 = vbcast.lane.b32.xlu0 %v1061_v48, 272  ;;  %1075 = vbcast.lane.b32.xlu1 %v1061_v48, 280 }
 0x314   : > { %v961_v49 = vpop.f32.mrb[4].mxu1  ;;  %v1064_v51 = vpop.permute.xlu0 %1063 }
 0x315   : > { %v963_v50 = vpop.f32.mrb[5].mxu1  ;;  %v1068_v52 = vpop.permute.xlu1 %1067 }
 0x318   : > { %v1072_v62 = vpop.permute.xlu0 %1071 }
 0x319   : > { %v1076_v63 = vpop.permute.xlu1 %1075 }
 0x320   : > { %v1035_v53 = vpop.f32.mrb[6].mxu1 }
 0x321   : > { %v1040_v54 = vmul.f32 %v1035_v53, %v961_v49  ;;  %v1037_v55 = vpop.f32.mrb[7].mxu1 }
 0x322   : > { %v1041_v56 = vmul.f32 %v1037_v55, %v963_v50 }
 0x323   : > { %v1045_v57 = vrot.slane %v1040_v54, %v1044_v47 }
 0x324   : > { %v1049_v32 = vrot.slane %v1041_v56, %v1044_v47 }
 0x325   : > { %v1050_v58 = vmul.f32 %v1045_v57, %v1723_v19  ;;  %v1052_v59 = vmul.f32 %v1045_v57, %v1738_v28  ;;  %v1054_v60 = vmul.f32 %v1045_v57, %v1727_v21  ;;  %v1056_v61 = vmul.f32 %v1045_v57, %v1751_v34 }
 0x326   : > { %v1051_v0 = vmul.f32 %v1049_v32, %v1725_v20  ;;  %v1053_v1 = vmul.f32 %v1049_v32, %v1740_v29  ;;  %v1055_v3 = vmul.f32 %v1049_v32, %v1731_v23  ;;  %v1057_v4 = vmul.f32 %v1049_v32, %v1753_v35 }
 0x327   : > { %v1077_v5 = vmul.f32 %v1064_v51, %v1050_v58  ;;  %v1079_v2 = vmul.f32 %v1068_v52, %v1052_v59  ;;  %v1081_v6 = vmul.f32 %v1072_v62, %v1054_v60  ;;  %v1083_v19 = vmul.f32 %v1076_v63, %v1056_v61 }
 0x328   : > { %v1078_v20 = vmul.f32 %v1064_v51, %v1051_v0  ;;  %v1080_v21 = vmul.f32 %v1068_v52, %v1053_v1  ;;  %v1082_v23 = vmul.f32 %v1072_v62, %v1055_v3  ;;  %v1084_v28 = vmul.f32 %v1076_v63, %v1057_v4 }
 0x329   : > { %1085 = vst [vmem:[%s408_s0] sm:$0xff] %v1077_v5  ;;  %1087 = vst [vmem:[%s408_s0 + $0x10] sm:$0xff] %v1079_v2 }
 0x32a   : > { %1089 = vst [vmem:[%s408_s0 + $0x20] sm:$0xff] %v1081_v6  ;;  %1091 = vst [vmem:[%s408_s0 + $0x30] sm:$0xff] %v1083_v19 }
 0x32b   : > { %1086 = vst [vmem:[%s408_s0 + $0x8] sm:$0xff] %v1078_v20  ;;  %1088 = vst [vmem:[%s408_s0 + $0x18] sm:$0xff] %v1080_v21 }
 0x32c   : > { %1090 = vst [vmem:[%s408_s0 + $0x28] sm:$0xff] %v1082_v23  ;;  %1092 = vst [vmem:[%s408_s0 + $0x38] sm:$0xff] %v1084_v28 }
 0x32d   : > { %1452 = shalt.err (!%p1449_p1)
}
 0x32e   : > { %s1453_s14 = scalar_lea.hbm %s1921_s10, 1024  ;;  %s1457_s16 = scalar_lea.hbm %s1979_s11, 2048 }
 0x32f   : > { %p1454_p2 = scmp.ne.s32.totalorder %s1921_s10, %s1453_s14  ;;  %p1458_p9 = scmp.lt.u32.totalorder %s1921_s10, %s1979_s11 }
 0x330   : > { %p1459_p5 = scmp.lt.u32.totalorder %s1457_s16, %s1453_s14  ;;  %p1461_p10 = scmp.lt.u32.totalorder %s1453_s14, %s1921_s10 }
 0x331   : > { %p1455_p3 = pnand %p1454_p2, %p1998_p12 }
 0x332   : > { %p1460_p6 = por %p1459_p5, %p1458_p9 }
 0x333   : > { %p1456_p4 = pneg %p1455_p3 }
 0x334   : > { %p1462_p0 = por %p1461_p10, %p1460_p6 }
 0x336   : > { %p1463_p7 = pnand %p1462_p0, %p1456_p4 }
 0x338   : > { %1466 = shalt.err (!%p1463_p7)
}
 0x339   : > { %s1525_s20 = smov 256   ;;  %s1526_s18 = smov 16  }
 0x33a   : > { %1338 = dma.vmem_to_hbm [thread:$0]  (%p1998_p12), %s1923_s12, 1024, %s1921_s10, %s1927_s19, %s1525_s20, %s1525_s20, %s1526_s18  }
 0x33b PF: > { %p1355_p8 = scmp.ge.s32.totalorder %s1509_s24, 2  ;;  %s1122_s26 = sand.u32 1, %s1497_s21  }
 0x33c   : > { %p1999_p11 = scmp.ne.s32.totalorder %s1987_s30, 0  ;;  %s1123_s13 = scalar_lea.sflag [#allocation5], %s1122_s26 }
 0x33e   : > { %p1348_p13 = pnand %p1355_p8, %p1999_p11 }
 0x340   : > { %1492 = dma.done.wait (!%p1348_p13), %s1123_s13, 1024  }
 0x341   : > { %1494 = vsyncadd (!%p1348_p13), %s1123_s13, 4294966272  ;;  %p25_p1 = scmp.ge.s32.totalorder %s1618_s25, 4   ;;  %s2000_s21 = smov %s1501_s22 }
 0x342   : > { %s2001_s22 = smov %s1505_s23  ;;  %s2002_s23 = smov %s1629_s28 }
 0x343   : > { %s2003_s24 = smov %s1618_s25  ;;  %27 = sbr.rel (!%p25_p1) target bundleno = 9 (0x9), region = 108 }
 0x34a   :  { %1128 = vsyncpa [#allocation5], 1 }
 0x34b   :  { %1130 = vsyncpa [#allocation5 + $0x1], 1 }
 0x34c   :  { %1131 = vsyncpa [#allocation6], 1 }
 0x34d   :  { %1133 = vsyncpa [#allocation6 + $0x1], 1 }
 0x34e   :  { %1134 = vsyncpa [#allocation8], 1 }

</bundles_post_ra>
